<compile_context>
chip_gen: v7x
topology: tpu7x:2x2x1
jax: 0.10.0
libtpu: 0.0.40
codegen_flags: <defaults>
</compile_context>

<pallas_src>
import functools

import jax
import jax.numpy as jnp
from jax.experimental import pallas as pl
from jax.experimental.pallas import tpu as pltpu

EPS = 1e-5  # nn.GroupNorm default


# ---------------------------------------------------------------------------
# Standalone GroupNorm(num_groups=1, num_channels=C).
# grid = (B,): one batch element per step ("parallel" -> megacore sharding).
# Single traversal: sum and sum-of-squares, f32 accumulation.
# ---------------------------------------------------------------------------
def _groupnorm1_kernel(x_ref, g_ref, b_ref, o_ref):
    x = x_ref[0].astype(jnp.float32)                 # (C, HW)
    n = x.shape[0] * x.shape[1]
    s = jnp.sum(x)
    ss = jnp.sum(x * x)
    mean = s / n
    var = ss / n - mean * mean                       # biased variance (PyTorch GN)
    inv = jax.lax.rsqrt(var + EPS)
    o_ref[0] = ((x - mean) * inv * g_ref[...] + b_ref[...]).astype(o_ref.dtype)


def groupnorm1(x_nchw, gamma, beta):
    B, C, H, W = x_nchw.shape
    HW = H * W
    x = x_nchw.reshape(B, C, HW)                     # lane axis = HW (no transpose)
    g = gamma.reshape(C, 1).astype(jnp.float32)
    b = beta.reshape(C, 1).astype(jnp.float32)

    out = pl.pallas_call(
        _groupnorm1_kernel,
        out_shape=jax.ShapeDtypeStruct((B, C, HW), x.dtype),
        grid_spec=pl.GridSpec(
            grid=(B,),
            in_specs=[
                pl.BlockSpec((1, C, HW), lambda n: (n, 0, 0)),
                pl.BlockSpec((C, 1), lambda n: (0, 0)),
                pl.BlockSpec((C, 1), lambda n: (0, 0)),
            ],
            out_specs=pl.BlockSpec((1, C, HW), lambda n: (n, 0, 0)),
        ),
        compiler_params=pltpu.CompilerParams(
            dimension_semantics=("parallel",)),
        cost_estimate=pl.CostEstimate(
            flops=8 * B * C * HW,
            transcendentals=B,
            bytes_accessed=2 * B * C * HW * x.dtype.itemsize),
    )(x, g, b)
    return out.reshape(B, C, H, W)


# ---------------------------------------------------------------------------
# Standalone fn = Conv2d(dim, dim, 1): per-batch (Cout, Cin) @ (Cin, HW),
# tiled over the spatial (lane) axis; both grid axes "parallel".
# ---------------------------------------------------------------------------
def _pick_spatial_tile(hw, max_tile=1024):
    """Largest multiple of 128 that divides hw (<= max_tile); else full hw."""
    if hw % 128 != 0:
        return hw
    t = min(max_tile, hw)
    t -= t % 128
    while t >= 128:
        if hw % t == 0:
            return t
        t -= 128
    return hw


def _conv1x1_kernel(x_ref, w_ref, b_ref, o_ref):
    # x: (1, Cin, T), w: (Cout, Cin) bf16, b: (Cout, 1) f32 -> o: (1, Cout, T)
    xn = x_ref[0].astype(jnp.bfloat16)
    acc = jnp.dot(w_ref[...], xn, preferred_element_type=jnp.float32)
    o_ref[0] = (acc + b_ref[...]).astype(o_ref.dtype)


def conv1x1(x_nchw, weight, bias):
    # weight: (Cout, Cin) (PyTorch Conv2d(...,1) weight squeezed), bias: (Cout,)
    B, C, H, W = x_nchw.shape
    Cout = weight.shape[0]
    HW = H * W
    T = _pick_spatial_tile(HW)
    x = x_nchw.reshape(B, C, HW)                     # lane axis = HW; no NHWC transpose
    w = weight.astype(jnp.bfloat16)                  # MXU lhs
    b = bias.reshape(Cout, 1).astype(jnp.float32)

    out = pl.pallas_call(
        _conv1x1_kernel,
        out_shape=jax.ShapeDtypeStruct((B, Cout, HW), x_nchw.dtype),
        grid_spec=pl.GridSpec(
            grid=(B, HW // T),
            in_specs=[
                pl.BlockSpec((1, C, T), lambda n, t: (n, 0, t)),
                pl.BlockSpec((Cout, C), lambda n, t: (0, 0)),
                pl.BlockSpec((Cout, 1), lambda n, t: (0, 0)),
            ],
            out_specs=pl.BlockSpec((1, Cout, T), lambda n, t: (n, 0, t)),
        ),
        compiler_params=pltpu.CompilerParams(
            dimension_semantics=("parallel", "parallel")),
        cost_estimate=pl.CostEstimate(
            flops=2 * B * Cout * C * HW,
            transcendentals=0,
            bytes_accessed=(B * C * HW + B * Cout * HW) * x_nchw.dtype.itemsize),
    )(x, w, b)
    return out.reshape(B, Cout, H, W)


# ---------------------------------------------------------------------------
# Fused PreNorm(dim, Conv2d(dim, dim, 1)): one pallas_call, no HBM round trip
# of the normalized activation, GN affine folded into the conv weights.
# ---------------------------------------------------------------------------
def _prenorm_conv1x1_kernel(x_ref, w_ref, b_ref, o_ref):
    # x: (1, Cin, HW) raw input; w: (Cout, Cin) bf16 = conv_w * gamma;
    # b: (Cout, 1) f32 = conv_w @ beta + conv_b.
    x = x_ref[0].astype(jnp.float32)                 # (Cin, HW)
    n = x.shape[0] * x.shape[1]
    s = jnp.sum(x)
    ss = jnp.sum(x * x)
    mean = s / n
    var = ss / n - mean * mean                       # biased variance (PyTorch GN)
    inv = jax.lax.rsqrt(var + EPS)
    xn = ((x - mean) * inv).astype(jnp.bfloat16)     # MXU rhs, lane axis = HW
    acc = jnp.dot(w_ref[...], xn, preferred_element_type=jnp.float32)  # (Cout, HW)
    o_ref[0] = (acc + b_ref[...]).astype(o_ref.dtype)


def pre_norm_conv1x1(x_nchw, gamma, beta, conv_w, conv_b):
    B, C, H, W = x_nchw.shape
    Cout = conv_w.shape[0]
    HW = H * W
    x = x_nchw.reshape(B, C, HW)

    # Fold the GroupNorm affine into the 1x1 conv (algebraically identical):
    #   W @ (xn * gamma + beta) + b = (W * gamma) @ xn + (W @ beta + b)
    w32 = conv_w.astype(jnp.float32)
    w_fold = (w32 * gamma.astype(jnp.float32)[None, :]).astype(jnp.bfloat16)
    b_fold = (w32 @ beta.astype(jnp.float32)
              + conv_b.astype(jnp.float32)).reshape(Cout, 1)

    # Double-buffered in+out blocks (f32) per grid step; keep headroom vs the
    # v7x 64 MiB budget.  (For very large C*H*W per batch, switch to an
    # HW-tiled two-pass stats kernel instead of one block per batch.)
    block_bytes = 2 * (C * HW + Cout * HW) * 4 + Cout * C * 2 + Cout * 4
    vmem_limit = int(min(max(4 * block_bytes, 32 * 1024 * 1024), 48 * 1024 * 1024))

    out = pl.pallas_call(
        _prenorm_conv1x1_kernel,
        out_shape=jax.ShapeDtypeStruct((B, Cout, HW), x_nchw.dtype),
        grid_spec=pl.GridSpec(
            grid=(B,),
            in_specs=[
                pl.BlockSpec((1, C, HW), lambda n: (n, 0, 0)),
                pl.BlockSpec((Cout, C), lambda n: (0, 0)),
                pl.BlockSpec((Cout, 1), lambda n: (0, 0)),
            ],
            out_specs=pl.BlockSpec((1, Cout, HW), lambda n: (n, 0, 0)),
        ),
        compiler_params=pltpu.CompilerParams(
            dimension_semantics=("parallel",),
            vmem_limit_bytes=vmem_limit),
        cost_estimate=pl.CostEstimate(
            flops=2 * B * Cout * C * HW + 8 * B * C * HW,
            transcendentals=B,
            bytes_accessed=(B * C * HW + B * Cout * HW) * x_nchw.dtype.itemsize),
    )(x, w_fold, b_fold)
    return out.reshape(B, Cout, H, W)


def pre_norm(x_nchw, gamma, beta, fn):
    """Generic PreNorm: x -> fn(GroupNorm(1, dim)(x)).  Prefer
    pre_norm_conv1x1 when fn is a 1x1 conv (fused, no HBM round trip)."""
    return fn(groupnorm1(x_nchw, gamma, beta))


# ---------------------------------------------------------------------------
# Pure-JAX references (module semantics).
# ---------------------------------------------------------------------------
def _reference_groupnorm(x, gamma, beta):
    B, C, H, W = x.shape
    xr = x.reshape(B, -1).astype(jnp.float32)
    mean = jnp.mean(xr, axis=1, keepdims=True)
    var = jnp.mean((xr - mean) ** 2, axis=1, keepdims=True)
    xn = ((xr - mean) / jnp.sqrt(var + EPS)).reshape(B, C, H, W)
    return xn * gamma.reshape(1, C, 1, 1) + beta.reshape(1, C, 1, 1)


def _reference_prenorm_conv(x, gamma, beta, w, b):
    xn = _reference_groupnorm(x, gamma, beta)
    y = jnp.einsum("bchw,oc->bohw", xn, w.astype(jnp.float32),
                   precision=jax.lax.Precision.HIGHEST)
    return y + b.reshape(1, -1, 1, 1)


if __name__ == "__main__":
    key = jax.random.PRNGKey(0)
    k_x, k_g, k_b, k_w, k_cb = jax.random.split(key, 5)

    B, C, H, W = 2, 4, 16, 16
    x = jax.random.normal(k_x, (B, C, H, W), dtype=jnp.float32)

    # Non-trivial GroupNorm affine (PyTorch init is gamma=1, beta=0); exercises
    # the affine folding for real.
    gamma = 1.0 + 0.1 * jax.random.normal(k_g, (C,), dtype=jnp.float32)
    beta = 0.1 * jax.random.normal(k_b, (C,), dtype=jnp.float32)

    # fn = Conv2d(C, C, kernel_size=1)
    conv_w = 0.1 * jax.random.normal(k_w, (C, C), dtype=jnp.float32)
    conv_b = 0.1 * jax.random.normal(k_cb, (C,), dtype=jnp.float32)

    # 1) Standalone GroupNorm kernel (all f32) — tight check.
    gn = jax.block_until_ready(groupnorm1(x, gamma, beta))
    gn_ref = _reference_groupnorm(x, gamma, beta)
    assert gn.shape == (B, C, H, W)
    assert jnp.allclose(gn, gn_ref, atol=1e-4, rtol=1e-4), "groupnorm1 mismatch"

    # 2) Fused PreNorm + 1x1 conv.  bf16 MXU operands -> ~0.4% relative
    #    rounding per term, so the tolerance vs the pure-f32 reference is
    #    sized accordingly.
    y_fused = jax.block_until_ready(pre_norm_conv1x1(x, gamma, beta, conv_w, conv_b))
    y_ref = _reference_prenorm_conv(x, gamma, beta, conv_w, conv_b)
    assert y_fused.shape == (B, C, H, W)
    assert jnp.allclose(y_fused, y_ref, atol=3e-2, rtol=3e-2), "fused prenorm mismatch"

    # 3) Generic PreNorm path (GroupNorm kernel, then tiled 1x1-conv kernel).
    fn = functools.partial(conv1x1, weight=conv_w, bias=conv_b)
    y_gen = jax.block_until_ready(pre_norm(x, gamma, beta, fn))
    assert y_gen.shape == (B, C, H, W)
    assert jnp.allclose(y_gen, y_ref, atol=3e-2, rtol=3e-2), "generic prenorm mismatch"

    print("KERNEL_OK")
</pallas_src>

<mosaic_0001>
module attributes {stable_mosaic.version = 11 : i64} {
  func.func @_groupnorm1_kernel(%arg0: i32, %arg1: memref<1x4x256xf32, #tpu.memory_space<vmem>>, %arg2: memref<4x1xf32, #tpu.memory_space<vmem>>, %arg3: memref<4x1xf32, #tpu.memory_space<vmem>>, %arg4: memref<1x4x256xf32, #tpu.memory_space<vmem>>) attributes {dimension_semantics = [#tpu.dimension_semantics<parallel>], iteration_bounds = array<i64: 2>, scalar_prefetch = 0 : i64, scratch_operands = 0 : i64, tpu.core_type = #tpu.core_type<tc>, window_params = [{transform_indices = @transform_0, window_bounds = array<i64: 1, 4, 256>}, {pipeline_mode = #tpu.pipeline_mode<synchronous>, transform_indices = @transform_1, window_bounds = array<i64: 4, 1>}, {pipeline_mode = #tpu.pipeline_mode<synchronous>, transform_indices = @transform_2, window_bounds = array<i64: 4, 1>}, {transform_indices = @transform_3, window_bounds = array<i64: 1, 4, 256>}]} {
    %c0 = arith.constant 0 : index
    %c0_0 = arith.constant 0 : index
    %c0_1 = arith.constant 0 : index
    %0 = vector.load %arg1[%c0, %c0_0, %c0_1] : memref<1x4x256xf32, #tpu.memory_space<vmem>>, vector<1x4x256xf32>
    %1 = vector.shape_cast %0 : vector<1x4x256xf32> to vector<4x256xf32>
    %2 = vector.shape_cast %1 : vector<4x256xf32> to vector<1x4x256xf32>
    %cst = arith.constant dense<0.000000e+00> : vector<1xf32>
    %3 = vector.multi_reduction <add>, %2, %cst [1, 2] : vector<1x4x256xf32> to vector<1xf32>
    %4 = vector.shape_cast %3 : vector<1xf32> to vector<1x1x1xf32>
    %5 = vector.extract %4[0, 0, 0] : f32 from vector<1x1x1xf32>
    %6 = arith.mulf %1, %1 : vector<4x256xf32>
    %7 = vector.shape_cast %6 : vector<4x256xf32> to vector<1x4x256xf32>
    %cst_2 = arith.constant dense<0.000000e+00> : vector<1xf32>
    %8 = vector.multi_reduction <add>, %7, %cst_2 [1, 2] : vector<1x4x256xf32> to vector<1xf32>
    %9 = vector.shape_cast %8 : vector<1xf32> to vector<1x1x1xf32>
    %10 = vector.extract %9[0, 0, 0] : f32 from vector<1x1x1xf32>
    %cst_3 = arith.constant 1.024000e+03 : f32
    %11 = arith.divf %5, %cst_3 : f32
    %cst_4 = arith.constant 1.024000e+03 : f32
    %12 = arith.divf %10, %cst_4 : f32
    %13 = arith.mulf %11, %11 : f32
    %14 = arith.subf %12, %13 : f32
    %cst_5 = arith.constant 9.99999974E-6 : f32
    %15 = arith.addf %14, %cst_5 : f32
    %16 = math.rsqrt %15 : f32
    %17 = vector.broadcast %11 : f32 to vector<4x256xf32>
    %18 = arith.subf %1, %17 : vector<4x256xf32>
    %19 = vector.broadcast %16 : f32 to vector<4x256xf32>
    %20 = arith.mulf %18, %19 : vector<4x256xf32>
    %c0_6 = arith.constant 0 : index
    %c0_7 = arith.constant 0 : index
    %21 = vector.load %arg2[%c0_6, %c0_7] : memref<4x1xf32, #tpu.memory_space<vmem>>, vector<4x1xf32>
    %22 = vector.broadcast %21 : vector<4x1xf32> to vector<4x256xf32>
    %23 = arith.mulf %20, %22 : vector<4x256xf32>
    %c0_8 = arith.constant 0 : index
    %c0_9 = arith.constant 0 : index
    %24 = vector.load %arg3[%c0_8, %c0_9] : memref<4x1xf32, #tpu.memory_space<vmem>>, vector<4x1xf32>
    %25 = vector.broadcast %24 : vector<4x1xf32> to vector<4x256xf32>
    %26 = arith.addf %23, %25 : vector<4x256xf32>
    %c0_10 = arith.constant 0 : index
    %c0_11 = arith.constant 0 : index
    %c0_12 = arith.constant 0 : index
    %27 = vector.load %arg4[%c0_10, %c0_11, %c0_12] : memref<1x4x256xf32, #tpu.memory_space<vmem>>, vector<1x4x256xf32>
    %28 = vector.shape_cast %27 : vector<1x4x256xf32> to vector<4x256xf32>
    %29 = vector.shape_cast %26 : vector<4x256xf32> to vector<1x4x256xf32>
    tpu.vector_store %arg4[%c0_10, %c0_11, %c0_12], %29 {strides = array<i32>} : memref<1x4x256xf32, #tpu.memory_space<vmem>>, vector<1x4x256xf32>,
    return
  }
  func.func @transform_0(%arg0: i32) -> (i32, i32, i32) {
    %c0_i32 = arith.constant 0 : i32
    %c0_i32_0 = arith.constant 0 : i32
    %c0_i32_1 = arith.constant 0 : i32
    return %arg0, %c0_i32, %c0_i32_0 : i32, i32, i32
  }
  func.func @transform_1(%arg0: i32) -> (i32, i32) {
    %c0_i32 = arith.constant 0 : i32
    %c0_i32_0 = arith.constant 0 : i32
    %c0_i32_1 = arith.constant 0 : i32
    return %c0_i32, %c0_i32_0 : i32, i32
  }
  func.func @transform_2(%arg0: i32) -> (i32, i32) {
    %c0_i32 = arith.constant 0 : i32
    %c0_i32_0 = arith.constant 0 : i32
    %c0_i32_1 = arith.constant 0 : i32
    return %c0_i32, %c0_i32_0 : i32, i32
  }
  func.func @transform_3(%arg0: i32) -> (i32, i32, i32) {
    %c0_i32 = arith.constant 0 : i32
    %c0_i32_0 = arith.constant 0 : i32
    %c0_i32_1 = arith.constant 0 : i32
    return %arg0, %c0_i32, %c0_i32_0 : i32, i32, i32
  }
}

</mosaic_0001>

<bundles_post_ra>
// kernel: tpu_custom_call.1
= control target key start
LH: loop header
LB: loop body
LE: loop exit
PB: predicated region body
PF: predicated region fallthrough
CT: control target
= control target key end

     0   :  { %8 = vsyncpa [#allocation3], 0  ;;  %s718_s0 = inlined_call_operand.hbm [shape: f32[2,4,256], index: 0, kind: input, shape index: {}]   ;;  %s719_s1 = inlined_call_operand.vmem [shape: f32[4,1], index: 1, kind: input, shape index: {}]   ;;  %s720_s2 = inlined_call_operand.vmem [shape: f32[4,1], index: 2, kind: input, shape index: {}]   ;;  %s721_s3 = inlined_call_operand.hbm [shape: f32[2,4,256], index: 3, kind: output, shape index: {}]  }
   0x1   :  { %10 = vsyncpa [#allocation3 + $0x1], 0 }
   0x2   :  { %11 = vsyncpa [#allocation4], 0 }
   0x3   :  { %13 = vsyncpa [#allocation4 + $0x1], 0  ;;  %s547_s12 = smov 0   ;;  %s549_s13 = smov 0  }
   0x4   :  { %s551_s14 = smov 0   ;;  %s553_s15 = smov 0  }
   0x5 LB: > { %s568_s16 = sadd.s32 4294967295, %s521_s15   ;;  %s350_s17 = sadd.s32 4294967294, %s521_s15   ;;  %s521_s15 = sphi %s553_s15, %s736_s15   ;;  %s517_s14 = sphi %s551_s14, %s735_s14   ;;  %s513_s13 = sphi %s549_s13, %s734_s13   ;;  %s509_s12 = sphi %s547_s12, %s733_s12  }
   0x6   : > { %s572_s18 = sadd.s32 1, %s521_s15   ;;  %s26_s19 = sadd.s32 1, %s517_s14 }
   0x7   : > { %s23_s20 = ssub.s32 %s521_s15, %s572_s18  ;;  %p33_p0 = scmp.ne.s32.totalorder %s517_s14, %s513_s13 }
   0x8   : > { %p24_p1 = scmp.eq.s32.totalorder %s23_s20, 0  ;;  %p34_p2 = scmp.eq.s32.totalorder %s521_s15, 0 }
   0x9   : > { %p39_p3 = scmp.ne.s32.totalorder %s513_s13, %s509_s12  ;;  %p40_p4 = scmp.eq.s32.totalorder %s568_s16, 0 }
   0xa   : > { %s584_s21 = scalar_select %p24_p1, %s517_s14, %s26_s19  }
   0xb   : > { %p586_p5 = por %p34_p2, %p33_p0  ;;  %p590_p6 = por %p40_p4, %p39_p3 }
   0xc   : > { %p105_p7 = scmp.eq.s32.totalorder %s568_s16, 1  ;;  %p111_p8 = scmp.eq.s32.totalorder %s350_s17, 1 }
   0xd   : > { %p384_p10 = scmp.lt.s32.totalorder %s521_s15, 2  ;;  %s137_s26 = sand.u32 1, %s517_s14  }
   0xe   : > { %p597_p11 = por %p105_p7, %p33_p0  ;;  %p601_p12 = por %p111_p8, %p39_p3 }
   0xf   : > { %s364_s27 = sshll.u32 %s521_s15, 7  ;;  %s353_s28 = sshll.u32 %s137_s26, 3 }
  0x10   : > { %s725_s24 = scalar_select %p597_p11, 1, 0 }
  0x11   : > { %s726_s25 = scalar_select %p601_p12, 1, 0 }
  0x12   : > { %s610_s4 = scalar_lea.hbm %s718_s0, %s364_s27  ;;  %s141_s5 = scalar_lea.vmem [#allocation2], %s353_s28 }
  0x13   : > { %s149_s6 = sshll.u32 %s141_s5, 4  ;;  %p614_p13 = pnand %p384_p10, %p586_p5  ;;  %s618_s6 = int_to_ptr.vmem [resolvable:$true] %s149_s6 }
  0x14   : > { %s138_s8 = scalar_lea.sflag [#allocation3], %s137_s26  ;;  %s425_s9 = scalar_lea.hbm %s610_s4, 128 }
  0x15   : > { %p426_p2 = scmp.ne.s32.totalorder %s610_s4, %s425_s9  ;;  %p427_p3 = pneg %p614_p13 }
  0x16   : > { %s430_s17 = scalar_lea.hbm %s718_s0, 256  ;;  %p431_p5 = scmp.lt.u32.totalorder %s610_s4, %s718_s0 }
  0x17   : > { %p428_p4 = pnand %p427_p3, %p426_p2  ;;  %p432_p8 = scmp.lt.u32.totalorder %s430_s17, %s425_s9 }
  0x18   : > { %p434_p9 = scmp.lt.u32.totalorder %s425_s9, %s610_s4 }
  0x19   : > { %p429_p7 = pneg %p428_p4  ;;  %p433_p10 = por %p432_p8, %p431_p5 }
  0x1b   : > { %p435_p0 = por %p434_p9, %p433_p10 }
  0x1d   : > { %p436_p1 = pnand %p435_p0, %p429_p7 }
  0x1f   : > { %439 = shalt.err (!%p436_p1)
}
  0x20   : > { %s440_s22 = scalar_lea.vmem %s618_s6, 128  ;;  %s523_s26 = smov [#allocation2]  }
  0x21   : > { %p441_p2 = scmp.ne.s32.totalorder %s618_s6, %s440_s22  ;;  %s445_s27 = sshll.u32 %s523_s26, 4  ;;  %s446_s27 = int_to_ptr.vmem [resolvable:$false] %s445_s27 }
  0x22   : > { %s447_s28 = scalar_lea.vmem %s446_s27, 256  ;;  %p448_p11 = scmp.lt.s32.totalorder %s618_s6, %s446_s27 }
  0x23   : > { %p443_p4 = pnand %p441_p2, %p427_p3  ;;  %p449_p5 = scmp.lt.s32.totalorder %s447_s28, %s440_s22 }
  0x25   : > { %p444_p12 = pneg %p443_p4  ;;  %p450_p8 = por %p449_p5, %p448_p11 }
  0x27   : > { %p451_p9 = pnand %p450_p8, %p444_p12 }
  0x29   : > { %454 = shalt.err (!%p451_p9)
}
  0x2a   : > { %379 = dma.hbm_to_vmem [thread:$0]  (!%p614_p13), %s610_s4, 128, %s618_s6, %s138_s8  }
  0x2b   : > { %p728_p0 = scmp.lt.s32.totalorder %s521_s15, 3  ;;  %p729_p1 = scmp.ge.s32.totalorder %s521_s15, 1 }
  0x2d   : > { %p155_p3 = pnand %p729_p1, %p728_p0 }
  0x2e   : > { %s652_s29 = sand.u32 (!%p155_p3), 1, %s513_s13  }
  0x2f   : > { %158 = sbr.rel (%p155_p3) target bundleno = 358 (0x166), region = 32  ;;  %s357_s30 = sshll.u32 (!%p155_p3), %s652_s29, 3 }
  0x30   : > { %s161_s5 = scalar_lea.sflag (!%p155_p3), [#allocation3], %s652_s29  ;;  %s164_s7 = scalar_lea.vmem (!%p155_p3), [#allocation2], %s357_s30 }
  0x36   : > { %500 = dma.done.wait (%p590_p6), %s161_s5, 128  }
  0x37   : > { %502 = vsyncadd (%p590_p6), %s161_s5, 4294967168  ;;  %vm191_vm0 = vcmask 1043456   ;;  %v187_v0 = vld [vmem:[%s164_s7] sm:$0xff]  ;;  %v524_v10 = vmov 0   ;;  %v525_v29 = vmov 839922192   ;;  %v244_v31 = vlaneseq }
  0x38   : > { %v189_v1 = vcombine.high %v187_v0, %v187_v0  ;;  %v192_v2 = vsel %vm191_vm0, %v187_v0, 0.0  ;;  %v204_v3 = vmul.f32 %v187_v0, %v187_v0  ;;  %420 = vset.pattern.permute.xlu1 %v524_v10  ;;  %v236_v11 = vld [vmem:[%s719_s1] sm:$0xf]  ;;  %421 = vset.pattern.permute.xlu0 %v524_v10  ;;  %v242_v30 = vunpack.c.l.s4 %v525_v29  ;;  %s365_s27 = sshll.u32 %s568_s16, 7  ;;  %s186_s28 = scalar_lea.vmem [#allocation5], %s357_s30 }
  0x39   : > { %239 = vperm.xlu1 %420, %v236_v11   ;;  %v250_v12 = vld [vmem:[%s720_s2] sm:$0xf]  ;;  %v245_v33 = vshrl.u32 %v244_v31, 7  ;;  %s280_s5 = sshll.u32 %s186_s28, 4  ;;  %s674_s6 = scalar_lea.hbm %s721_s3, %s365_s27  ;;  %s676_s5 = int_to_ptr.vmem [resolvable:$true] %s280_s5 }
  0x3a   : > { %v193_v4 = vsel %vm191_vm0, %v189_v1, 0.0  ;;  %v206_v5 = vcombine.high %v204_v3, %v204_v3  ;;  %v208_v6 = vsel %vm191_vm0, %v204_v3, 0.0  ;;  %v243_v32 = vunpack.c.0.s8 %v242_v30  ;;  %s266_s23 = scalar_lea.sflag [#allocation4], %s652_s29  ;;  %s455_s8 = scalar_lea.vmem %s676_s5, 128 }
  0x3b   : > { %v194_v7 = vadd.f32 %v193_v4, %v192_v2  ;;  %p456_p6 = scmp.ne.s32.totalorder %s676_s5, %s455_s8  ;;  %p730_p11 = scmp.ne.s32.totalorder %s725_s24, 0 }
  0x3c   : > { %v209_v8 = vsel %vm191_vm0, %v206_v5, 0.0  ;;  %v246_v36 = vsub.s32 %v243_v32, %v245_v33  ;;  %s526_s16 = smov [#allocation5]  }
  0x3d   : > { %195 = vadd.xlane.f32.xlu0 %v194_v7  ;;  %v210_v9 = vadd.f32 %v209_v8, %v208_v6  ;;  %253 = vperm.xlu1 %420, %v250_v12   ;;  %p457_p12 = pnand %p456_p6, %p730_p11  ;;  %s459_s30 = sshll.u32 %s526_s16, 4  ;;  %s460_s30 = int_to_ptr.vmem [resolvable:$false] %s459_s30 }
  0x3e   : > { %p462_p7 = scmp.lt.s32.totalorder %s676_s5, %s460_s30 }
  0x3f   : > { %p458_p13 = pneg %p457_p12 }
  0x41   : > { %211 = vadd.xlane.f32.xlu0 %v210_v9 }
  0xb8   : > { %v240_v34 = vpop.permute.xlu1 %239 }
  0xb9   : > { %v247_v40 = vrot.slane %v240_v34, %v246_v36 }
  0xbc   : > { %v254_v38 = vpop.permute.xlu1 %253 }
  0xbd   : > { %v261_v42 = vrot.slane %v254_v38, %v246_v36 }
  0xca   : > { %v196_v13 = vpop.xlane.xlu0 %195 }
  0xcb   : > { %v197_v14 = vrot.slane %v196_v13, 4 }
  0xcd   : > { %v198_v15 = vadd.f32 %v197_v14, %v196_v13 }
  0xce   : > { %v212_v16 = vpop.xlane.xlu0 %211 }
  0xcf   : > { %v199_v17 = vrot.slane %v198_v15, 2  ;;  %v213_v18 = vrot.slane %v212_v16, 4 }
  0xd1   : > { %v214_v19 = vadd.f32 %v213_v18, %v212_v16  ;;  %v200_v20 = vadd.f32 %v199_v17, %v198_v15 }
  0xd3   : > { %v215_v21 = vrot.slane %v214_v19, 2  ;;  %v201_v22 = vrot.slane %v200_v20, 1 }
  0xd5   : > { %v216_v23 = vadd.f32 %v215_v21, %v214_v19  ;;  %v202_v24 = vadd.f32 %v201_v22, %v200_v20 }
  0xd7   : > { %366 = vpush %v202_v24  ;;  %v217_v25 = vrot.slane %v216_v23, 1 }
  0xd9   : > { %v218_v26 = vadd.f32 %v217_v25, %v216_v23 }
  0xdb   : > { %368 = vpush %v218_v26 }
 0x108   : > { %s367_s9 = spop %366 }
 0x109   : > { %s222_s10 = smul.f32 0.0009765625, %s367_s9  ;;  %s461_s9 = scalar_lea.vmem %s460_s30, 256 }
 0x10a   : > { %p463_p10 = scmp.lt.s32.totalorder %s461_s9, %s455_s8 }
 0x10b   : > { %s226_s11 = smul.f32 %s222_s10, %s222_s10  ;;  %v232_v35 = vstv %s222_s10 }
 0x10c   : > { %s369_s17 = spop %368  ;;  %v233_v37 = vsub.f32 %v187_v0, %v232_v35  ;;  %p464_p2 = por %p463_p10, %p462_p7 }
 0x10d   : > { %s225_s19 = smul.f32 0.0009765625, %s369_s17 }
 0x10e   : > { %p465_p4 = pnand %p464_p2, %p458_p13 }
 0x10f   : > { %s227_s20 = ssub.f32 %s225_s19, %s226_s11 }
 0x111   : > { %s228_s22 = sadd.f32 1e-05, %s227_s20 }
 0x113   : > { %v229_v27 = vstv %s228_s22 }
 0x114   : > { %423 = vrsqrt.f32 %v229_v27 }
 0x11e   : > { %v424_v28 = vpop.eup %423 }
 0x11f   : > { %370 = vpush %v424_v28 }
 0x150   : > { %s371_s26 = spop %370 }
 0x151   : > { %v234_v39 = vstv %s371_s26 }
 0x152   : > { %v235_v41 = vmul.f32 %v234_v39, %v233_v37 }
 0x154   : > { %v249_v43 = vmul.f32 %v247_v40, %v235_v41 }
 0x156   : > { %v263_v44 = vadd.f32 %v261_v42, %v249_v43 }
 0x158   : > { %264 = vst [vmem:[%s186_s28] sm:$0xff] %v263_v44 }
 0x159   : > { %468 = shalt.err (!%p465_p4)
}
 0x15a   : > { %s469_s29 = scalar_lea.hbm %s674_s6, 128  ;;  %s473_s17 = scalar_lea.hbm %s721_s3, 256 }
 0x15b   : > { %p470_p5 = scmp.ne.s32.totalorder %s674_s6, %s469_s29  ;;  %p474_p0 = scmp.lt.u32.totalorder %s674_s6, %s721_s3 }
 0x15c   : > { %p475_p1 = scmp.lt.u32.totalorder %s473_s17, %s469_s29  ;;  %p477_p6 = scmp.lt.u32.totalorder %s469_s29, %s674_s6 }
 0x15d   : > { %p471_p8 = pnand %p470_p5, %p730_p11 }
 0x15e   : > { %p476_p3 = por %p475_p1, %p474_p0 }
 0x15f   : > { %p472_p9 = pneg %p471_p8 }
 0x160   : > { %p478_p12 = por %p477_p6, %p476_p3 }
 0x162   : > { %p479_p13 = pnand %p478_p12, %p472_p9 }
 0x164   : > { %482 = shalt.err (!%p479_p13)
}
 0x165   : > { %374 = dma.vmem_to_hbm [thread:$0]  (%p730_p11), %s676_s5, 128, %s674_s6, %s266_s23  }
 0x166 PF: > { %s292_s22 = sand.u32 1, %s509_s12   ;;  %p731_p7 = scmp.ne.s32.totalorder %s726_s25, 0 }
 0x167   : > { %p732_p10 = scmp.ge.s32.totalorder %s521_s15, 2  ;;  %s293_s26 = scalar_lea.sflag [#allocation4], %s292_s22 }
 0x169   : > { %p381_p2 = pnand %p732_p10, %p731_p7 }
 0x16b   : > { %504 = dma.done.wait (!%p381_p2), %s293_s26, 128  }
 0x16c   : > { %506 = vsyncadd (!%p381_p2), %s293_s26, 4294967168  ;;  %p16_p4 = scmp.ge.s32.totalorder %s572_s18, 4   ;;  %s733_s12 = smov %s513_s13 }
 0x16d   : > { %s734_s13 = smov %s517_s14  ;;  %s735_s14 = smov %s584_s21 }
 0x16e   : > { %s736_s15 = smov %s572_s18  ;;  %18 = sbr.rel (!%p16_p4) target bundleno = 5 (0x5), region = 77 }
 0x175   :  { %298 = vsyncpa [#allocation3], 1 }
 0x176   :  { %300 = vsyncpa [#allocation3 + $0x1], 1 }
 0x177   :  { %301 = vsyncpa [#allocation4], 1 }
 0x178   :  { %303 = vsyncpa [#allocation4 + $0x1], 1 }

</bundles_post_ra>
